<compile_context>
chip_gen: v6e
topology: v6e:2x2x1
jax: 0.10.0
libtpu: 0.0.40
codegen_flags: <defaults>
</compile_context>

<pallas_src>
import math
from functools import partial

import numpy as np
import jax
import jax.numpy as jnp
from jax.experimental import pallas as pl
from jax.experimental.pallas import tpu as pltpu


# ----------------------------- Pallas kernel ------------------------------ #
def hanet_kernel(x_ref, out_ref, w1_ref, bias_ref, w2_ref, w3_ref,
                 p2_ref, interp_ref, res_ref, acc_ref):
    # x_ref:    (1, tc, W*H)     f32   channel tile of the input image (lane-dense)
    # out_ref:  (1, Cout, Hh*Ww) f32   feature map to be re-weighted (lane-dense)
    # w1_ref:   (m1, tc)         f32   attention_first weight (BN scale folded), C-tiled
    # bias_ref: (nb, 3)          f32   packed biases: col0=b1, col1=bias2, col2=bias3
    # w2_ref:   (m2, 3*m1)       f32   attention_second im2col weight (BN folded)
    # w3_ref:   (Cout, 3*m2)     f32   attention_third im2col weight
    # p2_ref:   (W*H, Q)         bf16  pooling matrix (AdaptiveAvgPool + mean over H)
    # interp_ref: (Q, Hh*Ww)     bf16  linear-interp matrix with W_out broadcast folded in
    # res_ref:  (1, Cout, Hh*Ww) f32   output (aliased with out)
    # acc_ref:  (m1, Q)          f32   scratch: accumulated attention_first pre-activation
    c = pl.program_id(1)

    @pl.when(c == 0)
    def _init():
        acc_ref[...] = jnp.zeros_like(acc_ref)

    # ---- fused AdaptiveAvgPool2d + attention_first conv for this channel tile ----
    # x arrives as f32 (no extra wrapper cast pass over HBM); cast to bf16 in-register
    # right before the MXU matmul.   pooled_tile = x_tile @ P2   (K = W*H lane-dense)
    pooled = jnp.dot(x_ref[0].astype(jnp.bfloat16), p2_ref[...],
                     preferred_element_type=jnp.float32)                   # (tc, Q)
    # y1_pre += W1_tile @ pooled_tile   (plain (M,K)x(K,N); BN scale already folded)
    acc_ref[...] += jnp.dot(w1_ref[...], pooled,
                            preferred_element_type=jnp.float32)            # (m1, Q)

    @pl.when(c == pl.num_programs(1) - 1)
    def _finalize():
        m1, Q = acc_ref.shape
        m2 = w2_ref.shape[0]
        cout = w3_ref.shape[0]

        # attention_first: bias + ReLU (BN folded into w1 / b1)
        y1 = jnp.maximum(acc_ref[...] + bias_ref[0:m1, 0:1], 0.0)          # (m1, Q)

        # attention_second: k=3 pad=1 conv as ONE im2col matmul, +bias, ReLU
        # TODO(synk): could use per-tap matmuls with pltpu.roll instead of the concats;
        # this runs once per batch on a 16-lane array so it is off the hot path.
        z1 = jnp.zeros((m1, 1), jnp.float32)
        y1p = jnp.concatenate([z1, y1, z1], axis=1)                        # (m1, Q+2)
        y1c = jnp.concatenate(
            [y1p[:, 0:Q], y1p[:, 1:Q + 1], y1p[:, 2:Q + 2]], axis=0)       # (3*m1, Q)
        y2 = jnp.dot(w2_ref[...], y1c, preferred_element_type=jnp.float32)
        y2 = jnp.maximum(y2 + bias_ref[0:m2, 1:2], 0.0)                    # (m2, Q)

        # attention_third: k=3 pad=1 conv as ONE im2col matmul, +bias, sigmoid
        z2 = jnp.zeros((m2, 1), jnp.float32)
        y2p = jnp.concatenate([z2, y2, z2], axis=1)                        # (m2, Q+2)
        y2c = jnp.concatenate(
            [y2p[:, 0:Q], y2p[:, 1:Q + 1], y2p[:, 2:Q + 2]], axis=0)       # (3*m2, Q)
        y3 = jnp.dot(w3_ref[...], y2c, preferred_element_type=jnp.float32)
        att = jax.nn.sigmoid(y3 + bias_ref[0:cout, 2:3])                   # (Cout, Q)

        # linear interpolation Q -> H_out fused with the W_out broadcast (lane-dense);
        # bf16 operands, f32 accumulation on the MXU.
        att_full = jnp.dot(att.astype(jnp.bfloat16), interp_ref[...],
                           preferred_element_type=jnp.float32)             # (Cout, Hh*Ww)

        # full-lane elementwise re-weighting of the residual feature map
        res_ref[...] = out_ref[...] * att_full[None, :, :]


# --------------------- host-side constant matrix builders ------------------ #
def adaptive_pool_matrix(W, Q):
    """(W, Q) matrix implementing AdaptiveAvgPool over a size-W axis into Q bins."""
    P = np.zeros((W, Q), np.float32)
    for q in range(Q):
        s = (q * W) // Q
        e = -((-(q + 1) * W) // Q)
        P[s:e, q] = 1.0 / (e - s)
    return P


def linear_interp_matrix(Q, Hout):
    """(Q, Hout) matrix for F.interpolate(mode='linear', align_corners=False)."""
    h = np.arange(Hout)
    src = (h + 0.5) * (Q / Hout) - 0.5
    src = np.maximum(src, 0.0)
    i0 = np.minimum(np.floor(src).astype(np.int64), Q - 1)
    i1 = np.minimum(i0 + 1, Q - 1)
    lam = (src - i0).astype(np.float32)
    M = np.zeros((Q, Hout), np.float32)
    M[i0, h] += 1.0 - lam
    M[i1, h] += lam
    return M


# --------------------------- tiling / VMEM helpers -------------------------- #
def _pick_channel_tile(C, WH, target_bytes=2 << 20):
    """Channel tile sized by bytes (f32 x block ~<= target), dividing C, with
    tc == C or tc % 128 == 0 so the (m1, tc) weight block meets lane tiling."""
    if C % 128 != 0 or C * WH * 4 <= target_bytes:
        return C
    best = 128
    for tc in range(128, C + 1, 128):
        if C % tc == 0 and tc * WH * 4 <= target_bytes:
            best = tc
    return best


def _padded_vmem_bytes(shape, itemsize):
    """Approximate VMEM footprint of a block (last dim -> 128 lanes, 2nd-last -> sublanes)."""
    s = list(shape)
    s[-1] = -(-s[-1] // 128) * 128
    if len(s) >= 2:
        sublane = {4: 8, 2: 16, 1: 32}[itemsize]
        s[-2] = -(-s[-2] // sublane) * sublane
    n = 1
    for d in s:
        n *= d
    return n * itemsize


# ------------------------------ host wrapper ------------------------------- #
@partial(jax.jit, static_argnames=("pos_rfactor",), donate_argnames=("out",))
def hanet_conv_forward(x, out, params, pos_rfactor=8):
    (w1, s1, b1, w2, cb2, s2, b2, w3, cb3) = params
    B, C, W, H = x.shape
    _, Cout, Hh, Ww = out.shape
    WH, HWo = W * H, Hh * Ww
    Q = 128 // pos_rfactor
    m1, m2 = w1.shape[0], w2.shape[0]

    tc = _pick_channel_tile(C, WH)
    n_ct = C // tc

    # ---- fold BN(eval) into conv weights; pack the three tiny bias vectors ----
    w1f = s1 * w1                                                       # (m1, C)
    w2f = (w2 * s2[:, :, None]).transpose(0, 2, 1).reshape(m2, 3 * m1)  # (m2, 3*m1)
    w3f = w3.transpose(0, 2, 1).reshape(Cout, 3 * m2)                   # (Cout, 3*m2)
    nb = max(m1, m2, Cout)
    bias = jnp.zeros((nb, 3), jnp.float32)
    bias = bias.at[:m1, 0].set(b1[:, 0])
    bias = bias.at[:m2, 1].set((s2 * cb2 + b2)[:, 0])
    bias = bias.at[:Cout, 2].set(cb3[:, 0])

    # ---- constant matrices: pooling (mean over H folded in) and interpolation ----
    P = adaptive_pool_matrix(W, Q)                                      # (W, Q)
    P2 = jnp.asarray(np.repeat(P, H, axis=0) / H, jnp.bfloat16)         # (W*H, Q)
    M = linear_interp_matrix(Q, Hh)                                     # (Q, Hh)
    M2 = jnp.asarray(np.kron(M, np.ones((1, Ww), np.float32)),
                     jnp.bfloat16)                                      # (Q, Hh*Ww)

    # ---- lane-dense reshapes (contiguous bitcasts; bf16 cast of x happens in-kernel) ----
    x2 = x.reshape(B, C, WH)
    out2 = out.reshape(B, Cout, HWo)

    const1 = pl.Buffered(1)     # constant-index operands: single buffer, fetched once
    in_specs = [
        pl.BlockSpec((1, tc, WH), lambda b, c: (b, c, 0)),              # x channel tile (f32)
        pl.BlockSpec((1, Cout, HWo), lambda b, c: (b, 0, 0)),           # out (revisited over c)
        pl.BlockSpec((m1, tc), lambda b, c: (0, c)),                    # folded w1 tile
        pl.BlockSpec((nb, 3), lambda b, c: (0, 0), pipeline_mode=const1),        # biases
        pl.BlockSpec((m2, 3 * m1), lambda b, c: (0, 0), pipeline_mode=const1),   # im2col w2
        pl.BlockSpec((Cout, 3 * m2), lambda b, c: (0, 0), pipeline_mode=const1), # im2col w3
        pl.BlockSpec((WH, Q), lambda b, c: (0, 0), pipeline_mode=const1),        # pooling mat
        pl.BlockSpec((Q, HWo), lambda b, c: (0, 0), pipeline_mode=const1),       # interp mat
    ]
    out_specs = pl.BlockSpec((1, Cout, HWo), lambda b, c: (b, 0, 0))

    # explicit VMEM budget (>= the default scoped limit so the demo always compiles)
    vmem_need = (
        2 * _padded_vmem_bytes((tc, WH), 4)          # x block, double buffered
        + 2 * _padded_vmem_bytes((m1, tc), 4)        # w1 tile, double buffered
        + 4 * _padded_vmem_bytes((Cout, HWo), 4)     # out (in) + res (out), double buffered
        + _padded_vmem_bytes((nb, 3), 4)
        + _padded_vmem_bytes((m2, 3 * m1), 4)
        + _padded_vmem_bytes((Cout, 3 * m2), 4)
        + _padded_vmem_bytes((WH, Q), 2)             # P2, single buffered
        + _padded_vmem_bytes((Q, HWo), 2)            # M2, single buffered
        + _padded_vmem_bytes((m1, Q), 4)             # accumulator scratch
        + (2 << 20)                                  # slack for Mosaic internals
    )
    vmem_limit = int(min(max(int(vmem_need * 1.25), 32 << 20), 96 << 20))

    res2 = pl.pallas_call(
        hanet_kernel,
        out_shape=jax.ShapeDtypeStruct((B, Cout, HWo), out.dtype),
        grid_spec=pltpu.PrefetchScalarGridSpec(
            num_scalar_prefetch=0,
            grid=(B, n_ct),
            in_specs=in_specs,
            out_specs=out_specs,
            scratch_shapes=[pltpu.VMEM((m1, Q), jnp.float32)],
        ),
        # 'out' is consumed by the multiply and never needed again -> reuse its buffer
        # (paired with donate_argnames="out" on the jit so no defensive copy is made).
        input_output_aliases={1: 0},
        compiler_params=pltpu.CompilerParams(
            # batch axis is parallel (v7x: shards across the 2 TensorCores);
            # channel-tile axis is a reduction into the VMEM accumulator.
            dimension_semantics=("parallel", "arbitrary"),
            vmem_limit_bytes=vmem_limit,
        ),
    )(x2, out2, w1f, bias, w2f, w3f, P2, M2)

    return res2.reshape(B, Cout, Hh, Ww)


# -------------------------- pure-JAX reference ----------------------------- #
def hanet_ref(x, out, params, pos_rfactor=8):
    (w1, s1, b1, w2, cb2, s2, b2, w3, cb3) = params
    B, C, W, H = x.shape
    _, Cout, Hh, Ww = out.shape
    Q = 128 // pos_rfactor
    P = jnp.asarray(adaptive_pool_matrix(W, Q))
    M = jnp.asarray(linear_interp_matrix(Q, Hh))
    xm = jnp.mean(x, axis=-1)                                   # (B, C, W)
    pooled = jnp.einsum('bcw,wq->bcq', xm, P)                   # (B, C, Q)
    y1 = jnp.einsum('oc,bcq->boq', w1, pooled)
    y1 = jax.nn.relu(y1 * s1[None] + b1[None])
    y1p = jnp.pad(y1, ((0, 0), (0, 0), (1, 1)))
    y2 = sum(jnp.einsum('oi,biq->boq', w2[:, :, k], y1p[:, :, k:k + Q]) for k in range(3))
    y2 = jax.nn.relu((y2 + cb2[None]) * s2[None] + b2[None])
    y2p = jnp.pad(y2, ((0, 0), (0, 0), (1, 1)))
    y3 = sum(jnp.einsum('oi,biq->boq', w3[:, :, k], y2p[:, :, k:k + Q]) for k in range(3))
    att = jax.nn.sigmoid(y3 + cb3[None])
    att_h = jnp.einsum('boq,qh->boh', att, M)
    return out * att_h[:, :, :, None]


# ---------------------------------- main ----------------------------------- #
if __name__ == "__main__":
    # module hyper-params
    in_channel, out_channel = 64, 32
    kernel_size, r_factor, layer = 3, 8, 3
    pos_rfactor = 8
    Q = 128 // pos_rfactor                    # 16 pooled rows
    m1 = math.ceil(in_channel / r_factor)     # 8
    m2 = 2 * m1                               # 16

    # input shapes (small): x is (B, C, W, H), out is (B, Cout, H_out, W_out)
    B, W, H = 2, 32, 32
    Hh, Ww = 24, 16

    key = jax.random.PRNGKey(0)
    ks = jax.random.split(key, 16)
    f32 = jnp.float32

    x = jax.random.normal(ks[0], (B, in_channel, W, H), f32)
    out = jax.random.normal(ks[1], (B, out_channel, Hh, Ww), f32)

    # deterministic parameter init (synthetic, not a checkpoint)
    w1 = jax.random.normal(ks[2], (m1, in_channel), f32) * 0.2      # Conv1d(k=1) weight
    w2 = jax.random.normal(ks[3], (m2, m1, 3), f32) * 0.2           # Conv1d(k=3) weight
    cb2 = jax.random.normal(ks[4], (m2, 1), f32) * 0.1              # its bias
    w3 = jax.random.normal(ks[5], (out_channel, m2, 3), f32) * 0.2  # Conv1d(k=3) weight
    cb3 = jax.random.normal(ks[6], (out_channel, 1), f32) * 0.1     # its bias

    eps = 1e-5
    def bn_affine(kg, kb, km, kv, n):
        gamma = 1.0 + 0.1 * jax.random.normal(kg, (n, 1), f32)
        beta = 0.1 * jax.random.normal(kb, (n, 1), f32)
        mean = 0.1 * jax.random.normal(km, (n, 1), f32)
        var = 0.5 + jax.random.uniform(kv, (n, 1), dtype=f32)
        scale = gamma / jnp.sqrt(var + eps)
        bias = beta - mean * scale
        return scale, bias

    s1, b1 = bn_affine(ks[7], ks[8], ks[9], ks[10], m1)     # BN after attention_first
    s2, b2 = bn_affine(ks[11], ks[12], ks[13], ks[14], m2)  # BN inside attention_second

    params = (w1, s1, b1, w2, cb2, s2, b2, w3, cb3)

    # compute the reference BEFORE the kernel: `out` is donated to the kernel call.
    ref = jax.block_until_ready(hanet_ref(x, out, params, pos_rfactor=pos_rfactor))
    out_shape, out_dtype = out.shape, out.dtype

    res = hanet_conv_forward(x, out, params, pos_rfactor=pos_rfactor)
    res = jax.block_until_ready(res)

    assert res.shape == out_shape and res.dtype == out_dtype
    # tolerance accounts for the in-kernel bf16 cast of x and the bf16 pooling /
    # interpolation matrices (intentional precision trade; attention weights in [0,1]).
    np.testing.assert_allclose(np.asarray(res), np.asarray(ref), rtol=2e-2, atol=2e-2)

    print("KERNEL_OK")
</pallas_src>

<mosaic_0001>
module attributes {stable_mosaic.version = 11 : i64} {
  func.func @hanet_kernel(%arg0: i32, %arg1: i32, %arg2: memref<1x64x1024xf32, #tpu.memory_space<vmem>>, %arg3: memref<1x32x384xf32, #tpu.memory_space<vmem>>, %arg4: memref<8x64xf32, #tpu.memory_space<vmem>>, %arg5: memref<32x3xf32, #tpu.memory_space<vmem>>, %arg6: memref<16x24xf32, #tpu.memory_space<vmem>>, %arg7: memref<32x48xf32, #tpu.memory_space<vmem>>, %arg8: memref<1024x16xbf16, #tpu.memory_space<vmem>>, %arg9: memref<16x384xbf16, #tpu.memory_space<vmem>>, %arg10: memref<1x32x384xf32, #tpu.memory_space<vmem>>, %arg11: memref<8x16xf32, #tpu.memory_space<vmem>>) attributes {dimension_semantics = [#tpu.dimension_semantics<parallel>, #tpu.dimension_semantics<arbitrary>], iteration_bounds = array<i64: 2, 1>, scalar_prefetch = 0 : i64, scratch_operands = 1 : i64, tpu.core_type = #tpu.core_type<tc>, window_params = [{transform_indices = @transform_0, window_bounds = array<i64: 1, 64, 1024>}, {transform_indices = @transform_1, window_bounds = array<i64: 1, 32, 384>}, {transform_indices = @transform_2, window_bounds = array<i64: 8, 64>}, {pipeline_mode = #tpu.pipeline_mode<synchronous>, transform_indices = @transform_3, window_bounds = array<i64: 32, 3>}, {pipeline_mode = #tpu.pipeline_mode<synchronous>, transform_indices = @transform_4, window_bounds = array<i64: 16, 24>}, {pipeline_mode = #tpu.pipeline_mode<synchronous>, transform_indices = @transform_5, window_bounds = array<i64: 32, 48>}, {pipeline_mode = #tpu.pipeline_mode<synchronous>, transform_indices = @transform_6, window_bounds = array<i64: 1024, 16>}, {pipeline_mode = #tpu.pipeline_mode<synchronous>, transform_indices = @transform_7, window_bounds = array<i64: 16, 384>}, {transform_indices = @transform_8, window_bounds = array<i64: 1, 32, 384>}]} {
    %c0_i32 = arith.constant 0 : i32
    %0 = arith.cmpi eq, %arg1, %c0_i32 : i32
    %1 = arith.extui %0 : i1 to i32
    %c0_i32_0 = arith.constant 0 : i32
    %2 = arith.cmpi ne, %1, %c0_i32_0 : i32
    scf.if %2 {
      %cst_14 = arith.constant 0.000000e+00 : f32
      %16 = vector.broadcast %cst_14 : f32 to vector<8x16xf32>
      %c0_15 = arith.constant 0 : index
      %c0_16 = arith.constant 0 : index
      %17 = vector.load %arg11[%c0_15, %c0_16] : memref<8x16xf32, #tpu.memory_space<vmem>>, vector<8x16xf32>
      tpu.vector_store %arg11[%c0_15, %c0_16], %16 {strides = array<i32>} : memref<8x16xf32, #tpu.memory_space<vmem>>, vector<8x16xf32>,
    } else {
    }
    %c0 = arith.constant 0 : index
    %c0_1 = arith.constant 0 : index
    %c0_2 = arith.constant 0 : index
    %3 = vector.load %arg2[%c0, %c0_1, %c0_2] : memref<1x64x1024xf32, #tpu.memory_space<vmem>>, vector<1x64x1024xf32>
    %4 = vector.shape_cast %3 : vector<1x64x1024xf32> to vector<64x1024xf32>
    %5 = arith.truncf %4 : vector<64x1024xf32> to vector<64x1024xbf16>
    %c0_3 = arith.constant 0 : index
    %c0_4 = arith.constant 0 : index
    %6 = vector.load %arg8[%c0_3, %c0_4] : memref<1024x16xbf16, #tpu.memory_space<vmem>>, vector<1024x16xbf16>
    %cst = arith.constant dense<0.000000e+00> : vector<64x16xf32>
    %7 = tpu.matmul %5, %6, %cst {dimension_numbers = #tpu.dot_dimension_numbers<[1], [0], [0], [1], [0, 0, 1, 1], [], []>} : vector<64x1024xbf16>, vector<1024x16xbf16>, vector<64x16xf32> -> vector<64x16xf32>
    %c0_5 = arith.constant 0 : index
    %c0_6 = arith.constant 0 : index
    %8 = vector.load %arg11[%c0_5, %c0_6] : memref<8x16xf32, #tpu.memory_space<vmem>>, vector<8x16xf32>
    %c0_7 = arith.constant 0 : index
    %c0_8 = arith.constant 0 : index
    %9 = vector.load %arg4[%c0_7, %c0_8] : memref<8x64xf32, #tpu.memory_space<vmem>>, vector<8x64xf32>
    %cst_9 = arith.constant dense<0.000000e+00> : vector<8x16xf32>
    %10 = tpu.matmul %9, %7, %cst_9 {dimension_numbers = #tpu.dot_dimension_numbers<[1], [0], [0], [1], [0, 0, 1, 1], [], []>} : vector<8x64xf32>, vector<64x16xf32>, vector<8x16xf32> -> vector<8x16xf32>
    %11 = arith.addf %8, %10 : vector<8x16xf32>
    %c0_10 = arith.constant 0 : index
    %c0_11 = arith.constant 0 : index
    %12 = vector.load %arg11[%c0_10, %c0_11] : memref<8x16xf32, #tpu.memory_space<vmem>>, vector<8x16xf32>
    tpu.vector_store %arg11[%c0_10, %c0_11], %11 {strides = array<i32>} : memref<8x16xf32, #tpu.memory_space<vmem>>, vector<8x16xf32>,
    %c0_i32_12 = arith.constant 0 : i32
    %13 = arith.cmpi eq, %arg1, %c0_i32_12 : i32
    %14 = arith.extui %13 : i1 to i32
    %c0_i32_13 = arith.constant 0 : i32
    %15 = arith.cmpi ne, %14, %c0_i32_13 : i32
    scf.if %15 {
      %c0_14 = arith.constant 0 : index
      %c0_15 = arith.constant 0 : index
      %16 = vector.load %arg11[%c0_14, %c0_15] : memref<8x16xf32, #tpu.memory_space<vmem>>, vector<8x16xf32>
      %c0_16 = arith.constant 0 : index
      %c0_17 = arith.constant 0 : index
      %17 = vector.load %arg5[%c0_16, %c0_17] : memref<32x3xf32, #tpu.memory_space<vmem>>, vector<8x1xf32>
      %18 = vector.broadcast %17 : vector<8x1xf32> to vector<8x16xf32>
      %19 = arith.addf %16, %18 : vector<8x16xf32>
      %cst_18 = arith.constant 0.000000e+00 : f32
      %20 = vector.broadcast %cst_18 : f32 to vector<8x16xf32>
      %21 = arith.maximumf %19, %20 : vector<8x16xf32>
      %cst_19 = arith.constant 0.000000e+00 : f32
      %22 = vector.broadcast %cst_19 : f32 to vector<8x1xf32>
      %23 = tpu.concatenate %22, %21, %22 in 1 : vector<8x1xf32>, vector<8x16xf32>, vector<8x1xf32> -> vector<8x18xf32>
      %24 = vector.extract_strided_slice %23 {offsets = [0, 0], sizes = [8, 16], strides = [1, 1]} : vector<8x18xf32> to vector<8x16xf32>
      %25 = vector.extract_strided_slice %23 {offsets = [0, 1], sizes = [8, 16], strides = [1, 1]} : vector<8x18xf32> to vector<8x16xf32>
      %26 = vector.extract_strided_slice %23 {offsets = [0, 2], sizes = [8, 16], strides = [1, 1]} : vector<8x18xf32> to vector<8x16xf32>
      %27 = tpu.concatenate %24, %25, %26 in 0 : vector<8x16xf32>, vector<8x16xf32>, vector<8x16xf32> -> vector<24x16xf32>
      %c0_20 = arith.constant 0 : index
      %c0_21 = arith.constant 0 : index
      %28 = vector.load %arg6[%c0_20, %c0_21] : memref<16x24xf32, #tpu.memory_space<vmem>>, vector<16x24xf32>
      %cst_22 = arith.constant dense<0.000000e+00> : vector<16x16xf32>
      %29 = tpu.matmul %28, %27, %cst_22 {dimension_numbers = #tpu.dot_dimension_numbers<[1], [0], [0], [1], [0, 0, 1, 1], [], []>} : vector<16x24xf32>, vector<24x16xf32>, vector<16x16xf32> -> vector<16x16xf32>
      %c0_23 = arith.constant 0 : index
      %c1 = arith.constant 1 : index
      %30 = vector.load %arg5[%c0_23, %c1] : memref<32x3xf32, #tpu.memory_space<vmem>>, vector<16x1xf32>
      %31 = vector.broadcast %30 : vector<16x1xf32> to vector<16x16xf32>
      %32 = arith.addf %29, %31 : vector<16x16xf32>
      %cst_24 = arith.constant 0.000000e+00 : f32
      %33 = vector.broadcast %cst_24 : f32 to vector<16x16xf32>
      %34 = arith.maximumf %32, %33 : vector<16x16xf32>
      %cst_25 = arith.constant 0.000000e+00 : f32
      %35 = vector.broadcast %cst_25 : f32 to vector<16x1xf32>
      %36 = tpu.concatenate %35, %34, %35 in 1 : vector<16x1xf32>, vector<16x16xf32>, vector<16x1xf32> -> vector<16x18xf32>
      %37 = vector.extract_strided_slice %36 {offsets = [0, 0], sizes = [16, 16], strides = [1, 1]} : vector<16x18xf32> to vector<16x16xf32>
      %38 = vector.extract_strided_slice %36 {offsets = [0, 1], sizes = [16, 16], strides = [1, 1]} : vector<16x18xf32> to vector<16x16xf32>
      %39 = vector.extract_strided_slice %36 {offsets = [0, 2], sizes = [16, 16], strides = [1, 1]} : vector<16x18xf32> to vector<16x16xf32>
      %40 = tpu.concatenate %37, %38, %39 in 0 : vector<16x16xf32>, vector<16x16xf32>, vector<16x16xf32> -> vector<48x16xf32>
      %c0_26 = arith.constant 0 : index
      %c0_27 = arith.constant 0 : index
      %41 = vector.load %arg7[%c0_26, %c0_27] : memref<32x48xf32, #tpu.memory_space<vmem>>, vector<32x48xf32>
      %cst_28 = arith.constant dense<0.000000e+00> : vector<32x16xf32>
      %42 = tpu.matmul %41, %40, %cst_28 {dimension_numbers = #tpu.dot_dimension_numbers<[1], [0], [0], [1], [0, 0, 1, 1], [], []>} : vector<32x48xf32>, vector<48x16xf32>, vector<32x16xf32> -> vector<32x16xf32>
      %c0_29 = arith.constant 0 : index
      %c2 = arith.constant 2 : index
      %43 = vector.load %arg5[%c0_29, %c2] : memref<32x3xf32, #tpu.memory_space<vmem>>, vector<32x1xf32>
      %44 = vector.broadcast %43 : vector<32x1xf32> to vector<32x16xf32>
      %45 = arith.addf %42, %44 : vector<32x16xf32>
      %46 = arith.negf %45 : vector<32x16xf32>
      %47 = math.exp %46 : vector<32x16xf32>
      %cst_30 = arith.constant 1.000000e+00 : f32
      %48 = vector.broadcast %cst_30 : f32 to vector<32x16xf32>
      %49 = arith.addf %48, %47 : vector<32x16xf32>
      %50 = arith.divf %48, %49 : vector<32x16xf32>
      %51 = arith.truncf %50 : vector<32x16xf32> to vector<32x16xbf16>
      %c0_31 = arith.constant 0 : index
      %c0_32 = arith.constant 0 : index
      %52 = vector.load %arg9[%c0_31, %c0_32] : memref<16x384xbf16, #tpu.memory_space<vmem>>, vector<16x384xbf16>
      %cst_33 = arith.constant dense<0.000000e+00> : vector<32x384xf32>
      %53 = tpu.matmul %51, %52, %cst_33 {dimension_numbers = #tpu.dot_dimension_numbers<[1], [0], [0], [1], [0, 0, 1, 1], [], []>} : vector<32x16xbf16>, vector<16x384xbf16>, vector<32x384xf32> -> vector<32x384xf32>
      %c0_34 = arith.constant 0 : index
      %c0_35 = arith.constant 0 : index
      %c0_36 = arith.constant 0 : index
      %54 = vector.load %arg3[%c0_34, %c0_35, %c0_36] : memref<1x32x384xf32, #tpu.memory_space<vmem>>, vector<1x32x384xf32>
      %55 = vector.shape_cast %53 : vector<32x384xf32> to vector<1x32x384xf32>
      %56 = arith.mulf %54, %55 : vector<1x32x384xf32>
      %c0_37 = arith.constant 0 : index
      %c0_38 = arith.constant 0 : index
      %c0_39 = arith.constant 0 : index
      %57 = vector.load %arg10[%c0_37, %c0_38, %c0_39] : memref<1x32x384xf32, #tpu.memory_space<vmem>>, vector<1x32x384xf32>
      tpu.vector_store %arg10[%c0_37, %c0_38, %c0_39], %56 {strides = array<i32>} : memref<1x32x384xf32, #tpu.memory_space<vmem>>, vector<1x32x384xf32>,
    } else {
    }
    return
  }
  func.func @transform_0(%arg0: i32, %arg1: i32) -> (i32, i32, i32) {
    %c0_i32 = arith.constant 0 : i32
    %c0_i32_0 = arith.constant 0 : i32
    return %arg0, %arg1, %c0_i32 : i32, i32, i32
  }
  func.func @transform_1(%arg0: i32, %arg1: i32) -> (i32, i32, i32) {
    %c0_i32 = arith.constant 0 : i32
    %c0_i32_0 = arith.constant 0 : i32
    %c0_i32_1 = arith.constant 0 : i32
    return %arg0, %c0_i32, %c0_i32_0 : i32, i32, i32
  }
  func.func @transform_2(%arg0: i32, %arg1: i32) -> (i32, i32) {
    %c0_i32 = arith.constant 0 : i32
    %c0_i32_0 = arith.constant 0 : i32
    return %c0_i32, %arg1 : i32, i32
  }
  func.func @transform_3(%arg0: i32, %arg1: i32) -> (i32, i32) {
    %c0_i32 = arith.constant 0 : i32
    %c0_i32_0 = arith.constant 0 : i32
    %c0_i32_1 = arith.constant 0 : i32
    return %c0_i32, %c0_i32_0 : i32, i32
  }
  func.func @transform_4(%arg0: i32, %arg1: i32) -> (i32, i32) {
    %c0_i32 = arith.constant 0 : i32
    %c0_i32_0 = arith.constant 0 : i32
    %c0_i32_1 = arith.constant 0 : i32
    return %c0_i32, %c0_i32_0 : i32, i32
  }
  func.func @transform_5(%arg0: i32, %arg1: i32) -> (i32, i32) {
    %c0_i32 = arith.constant 0 : i32
    %c0_i32_0 = arith.constant 0 : i32
    %c0_i32_1 = arith.constant 0 : i32
    return %c0_i32, %c0_i32_0 : i32, i32
  }
  func.func @transform_6(%arg0: i32, %arg1: i32) -> (i32, i32) {
    %c0_i32 = arith.constant 0 : i32
    %c0_i32_0 = arith.constant 0 : i32
    %c0_i32_1 = arith.constant 0 : i32
    return %c0_i32, %c0_i32_0 : i32, i32
  }
  func.func @transform_7(%arg0: i32, %arg1: i32) -> (i32, i32) {
    %c0_i32 = arith.constant 0 : i32
    %c0_i32_0 = arith.constant 0 : i32
    %c0_i32_1 = arith.constant 0 : i32
    return %c0_i32, %c0_i32_0 : i32, i32
  }
  func.func @transform_8(%arg0: i32, %arg1: i32) -> (i32, i32, i32) {
    %c0_i32 = arith.constant 0 : i32
    %c0_i32_0 = arith.constant 0 : i32
    %c0_i32_1 = arith.constant 0 : i32
    return %arg0, %c0_i32, %c0_i32_0 : i32, i32, i32
  }
}

</mosaic_0001>

<bundles_post_ra>
// kernel: mul.17
= control target key start
LH: loop header
LB: loop body
LE: loop exit
PB: predicated region body
PF: predicated region fallthrough
CT: control target
= control target key end

     0   :  { %s34_s0 = inlined_call_operand.vmem [shape: f32[16,1], index: 0, kind: input, shape index: {}]   ;;  %s35_s1 = inlined_call_operand.vmem [shape: f32[16,1], index: 1, kind: input, shape index: {}]   ;;  %s36_s2 = inlined_call_operand.vmem [shape: f32[16,1], index: 2, kind: output, shape index: {}]  }
   0x1   :  { %v3_v0 = vld [vmem:[%s34_s0] sm:$0x1] }
   0x2   :  { %v4_v1 = vld [vmem:[%s35_s1] sm:$0x1] }
   0x3   :  { %v7_v2 = vmul.f32 %v4_v1, %v3_v0 }
   0x5   :  { %9 = vst [vmem:[%s36_s2] sm:$0x1] %v7_v2 }

// kernel: hanet_conv_forward.1
= control target key start
LH: loop header
LB: loop body
LE: loop exit
PB: predicated region body
PF: predicated region fallthrough
CT: control target
= control target key end

     0   :  { %s2433_s27 = smov 0   ;;  %s2435_s28 = smov 0   ;;  %s2899_s0 = inlined_call_operand.vmem [shape: f32[2,64,1024], index: 0, kind: input, shape index: {}]   ;;  %s2900_s1 = inlined_call_operand.vmem [shape: f32[2,32,384], index: 1, kind: input, shape index: {}, may-alias: {1,8}]   ;;  %s2901_s2 = inlined_call_operand.vmem [shape: f32[8,64], index: 2, kind: input, shape index: {}]   ;;  %s2902_s3 = inlined_call_operand.vmem [shape: f32[32,3], index: 3, kind: input, shape index: {}]   ;;  %s2903_s4 = inlined_call_operand.vmem [shape: f32[16,24], index: 4, kind: input, shape index: {}]   ;;  %s2904_s5 = inlined_call_operand.vmem [shape: f32[32,48], index: 5, kind: input, shape index: {}]   ;;  %s2905_s6 = inlined_call_operand.vmem [shape: bf16[1024,16], index: 6, kind: input, shape index: {}]   ;;  %s2906_s7 = inlined_call_operand.vmem [shape: bf16[16,384], index: 7, kind: input, shape index: {}]   ;;  %s2907_s8 = inlined_call_operand.vmem [shape: f32[2,32,384], index: 8, kind: output, shape index: {}, may-alias: {1,8}]  }
   0x1   :  { %s2437_s29 = smov 0  }
   0x2 LB: > { %s30_s30 = sadd.s32 1, %s2374_s28  ;;  %p1900_p0 = scmp.ge.s32.totalorder %s2378_s29, 1  ;;  %s2378_s29 = sphi %s2437_s29, %s18_s29   ;;  %s2374_s28 = sphi %s2435_s28, %s2933_s28   ;;  %s2370_s27 = sphi %s2433_s27, %s2932_s27  }
   0x3   : > { %p32_p1 = scmp.ge.s32.totalorder %s30_s30, 2  ;;  %p301_p2 = scmp.lt.s32.totalorder %s2378_s29, 3 }
   0x5   : > { %s2935_s30 = smov (%p32_p1, %s30_s30), 0  ;;  %p302_p3 = pnand %p1900_p0, %p301_p2 }
   0x7   : > { %305 = sbr.rel (%p302_p3) target bundleno = 1651 (0x673), region = 52 }
   0xc   : > { %v2272_v0 = vld [vmem:[%s2905_s6 + $0x78] sm:$0xff]   ;;  %v2276_v4 = vld [vmem:[%s2905_s6 + $0x70] sm:$0xff]   ;;  %v2280_v8 = vld [vmem:[%s2905_s6 + $0x68] sm:$0xff]   ;;  %p350_p4 = scmp.lt.s32.totalorder %s2370_s27, 1  ;;  %vm2381_vm0 = vmmov 0   ;;  %vm379_vm1 = vcmask 130048  }
   0xd   : > { %v2273_v1 = vld [vmem:[%s2905_s6 + $0xf8] sm:$0xff]   ;;  %1993 = vmatprep.subr.bf16.mxu0 %v2272_v0  ;;  %v2277_v5 = vld [vmem:[%s2905_s6 + $0xf0] sm:$0xff]   ;;  %v2281_v9 = vld [vmem:[%s2905_s6 + $0xe8] sm:$0xff]   ;;  %vm1251_vm2 = vcmask 523264   ;;  %s2383_s22 = smov 1   ;;  %vm1369_vm3 = vcmask 195584  }
   0xe   : > { %v2274_v2 = vld [vmem:[%s2905_s6 + $0x38] sm:$0xff]   ;;  %2033 = vmatprep.subr.bf16.mxu1 %v2273_v1  ;;  %v2278_v6 = vld [vmem:[%s2905_s6 + $0x30] sm:$0xff]   ;;  %v2282_v10 = vld [vmem:[%s2905_s6 + $0x28] sm:$0xff]   ;;  %s2937_s27 = smov (!%p350_p4, %s2370_s27), 1  ;;  %vm1344_vm4 = vcmask 7168   ;;  %vm1346_vm5 = vcmask 138240  }
   0xf   : > { %v2275_v3 = vld [vmem:[%s2905_s6 + $0xb8] sm:$0xff]   ;;  %1994 = vmatpush3.bf16.msra.mxu0 %v2274_v2  ;;  %v2279_v7 = vld [vmem:[%s2905_s6 + $0xb0] sm:$0xff]   ;;  %v2283_v11 = vld [vmem:[%s2905_s6 + $0xa8] sm:$0xff]   ;;  %s1992_s9 = sshll.u32 %s2937_s27, 9  ;;  %s2386_s10 = smov 127   ;;  %vm1507_vm6 = vcmask 392192  }
  0x10   : > { %2034 = vmatpush3.bf16.msra.mxu1 %v2275_v3  ;;  %1995 = vmatprep.subr.bf16.mxu0 %v2276_v4  ;;  %v2284_v12 = vld [vmem:[%s2905_s6 + $0x60] sm:$0xff]   ;;  %v2288_v16 = vld [vmem:[%s2905_s6 + $0x58] sm:$0xff]   ;;  %v2292_v20 = vld [vmem:[%s2905_s6 + $0x50] sm:$0xff]   ;;  %s2551_s18 = scalar_lea.vmem %s2899_s0, %s1992_s9  ;;  %s2385_s9 = smov 126  }
  0x11   : > { %2035 = vmatprep.subr.bf16.mxu1 %v2277_v5  ;;  %v2285_v13 = vld [vmem:[%s2905_s6 + $0xe0] sm:$0xff]   ;;  %v2289_v17 = vld [vmem:[%s2905_s6 + $0xd8] sm:$0xff]   ;;  %v2293_v21 = vld [vmem:[%s2905_s6 + $0xd0] sm:$0xff]   ;;  %s2234_s13 = smul.u32 96, %s2937_s27 }
  0x12   : > { %v2286_v14 = vld [vmem:[%s2905_s6 + $0x20] sm:$0xff]   ;;  %v2290_v18 = vld [vmem:[%s2905_s6 + $0x18] sm:$0xff]   ;;  %v2294_v22 = vld [vmem:[%s2905_s6 + $0x10] sm:$0xff]  }
  0x13   : > { %1996 = vmatpush3.bf16.msra.mxu0 %v2278_v6  ;;  %v2287_v15 = vld [vmem:[%s2905_s6 + $0xa0] sm:$0xff]   ;;  %v2291_v19 = vld [vmem:[%s2905_s6 + $0x98] sm:$0xff]   ;;  %v2295_v23 = vld [vmem:[%s2905_s6 + $0x90] sm:$0xff]   ;;  %s364_s16 = scalar_lea.vmem %s2900_s1, %s2234_s13  ;;  %s2876_s20 = scalar_lea.vmem %s2907_s8, %s2234_s13 }
  0x14   : > { %2036 = vmatpush3.bf16.msra.mxu1 %v2279_v7  ;;  %1997 = vmatprep.subr.bf16.mxu0 %v2280_v8  ;;  %v2296_v24 = vld [vmem:[%s2905_s6 + $0x48] sm:$0xff]   ;;  %v2300_v28 = vld [vmem:[%s2905_s6 + $0x40] sm:$0xff]   ;;  %v384_v34 = vld [vmem:[%s2551_s18 + $0x18] sm:$0xff] }
  0x15   : > { %2037 = vmatprep.subr.bf16.mxu1 %v2281_v9  ;;  %v2297_v25 = vld [vmem:[%s2905_s6 + $0xc8] sm:$0xff]   ;;  %v2301_v29 = vld [vmem:[%s2905_s6 + $0xc0] sm:$0xff]   ;;  %v392_v36 = vld [vmem:[%s2551_s18 + $0x58] sm:$0xff] }
  0x16   : > { %v2298_v26 = vld [vmem:[%s2905_s6 + $0x8] sm:$0xff]   ;;  %v2302_v30 = vld [vmem:[%s2905_s6] sm:$0xff]   ;;  %v448_v39 = vpack.c.bf16 %v392_v36, %v384_v34  ;;  %v383_v41 = vld [vmem:[%s2551_s18 + $0x10] sm:$0xff] }
  0x17   : > { %1998 = vmatpush3.bf16.msra.mxu0 %v2282_v10  ;;  %v2299_v27 = vld [vmem:[%s2905_s6 + $0x88] sm:$0xff]   ;;  %v2303_v31 = vld [vmem:[%s2905_s6 + $0x80] sm:$0xff]   ;;  %v391_v42 = vld [vmem:[%s2551_s18 + $0x50] sm:$0xff] }
  0x18   : > { %2038 = vmatpush3.bf16.msra.mxu1 %v2283_v11  ;;  %1999 = vmatprep.subr.bf16.mxu0 %v2284_v12  ;;  %v382_v32 = vld [vmem:[%s2551_s18 + $0x8] sm:$0xff]  ;;  %v381_v37 = vld [vmem:[%s2551_s18] sm:$0xff]  ;;  %v447_v43 = vpack.c.bf16 %v391_v42, %v383_v41  ;;  %v2304_v44 = vld [vmem:[%s2905_s6 + $0x178] sm:$0xff]  }
  0x19   : > { %2039 = vmatprep.subr.bf16.mxu1 %v2285_v13  ;;  %v390_v33 = vld [vmem:[%s2551_s18 + $0x48] sm:$0xff]  ;;  %v389_v38 = vld [vmem:[%s2551_s18 + $0x40] sm:$0xff]  ;;  %1086 = vmatprep.mubr.bf16.mxu1 %v448_v39  ;;  %v2305_v45 = vld [vmem:[%s2905_s6 + $0x1f8] sm:$0xff]  }
  0x1a   : > { %v446_v35 = vpack.c.bf16 %v390_v33, %v382_v32  ;;  %v445_v40 = vpack.c.bf16 %v389_v38, %v381_v37  ;;  %v2306_v46 = vld [vmem:[%s2905_s6 + $0x138] sm:$0xff]   ;;  %v2308_v48 = vld [vmem:[%s2905_s6 + $0x170] sm:$0xff]   ;;  %v398_v52 = vld [vmem:[%s2551_s18 + $0x88] sm:$0xff] }
  0x1b   : > { %2000 = vmatpush3.bf16.msra.mxu0 %v2286_v14  ;;  %v2307_v47 = vld [vmem:[%s2905_s6 + $0x1b8] sm:$0xff]   ;;  %v2309_v49 = vld [vmem:[%s2905_s6 + $0x1f0] sm:$0xff]   ;;  %v406_v53 = vld [vmem:[%s2551_s18 + $0xc8] sm:$0xff] }
  0x1c   : > { %2040 = vmatpush3.bf16.msra.mxu1 %v2287_v15  ;;  %2001 = vmatprep.subr.bf16.mxu0 %v2288_v16  ;;  %v2310_v50 = vld [vmem:[%s2905_s6 + $0x130] sm:$0xff]   ;;  %v400_v54 = vld [vmem:[%s2551_s18 + $0x98] sm:$0xff]  ;;  %v454_v56 = vpack.c.bf16 %v406_v53, %v398_v52  ;;  %v397_v58 = vld [vmem:[%s2551_s18 + $0x80] sm:$0xff] }
  0x1d   : > { %2041 = vmatprep.subr.bf16.mxu1 %v2289_v17  ;;  %1021 = vmatprep.mubr.bf16.mxu0 %v446_v35  ;;  %v2311_v51 = vld [vmem:[%s2905_s6 + $0x1b0] sm:$0xff]   ;;  %v408_v55 = vld [vmem:[%s2551_s18 + $0xd8] sm:$0xff]  ;;  %v405_v59 = vld [vmem:[%s2551_s18 + $0xc0] sm:$0xff] }
  0x1e   : > { %v456_v57 = vpack.c.bf16 %v408_v55, %v400_v54  ;;  %v399_v60 = vld [vmem:[%s2551_s18 + $0x90] sm:$0xff]  ;;  %v453_v61 = vpack.c.bf16 %v405_v59, %v397_v58  ;;  %v2312_v0 = vld [vmem:[%s2905_s6 + $0x168] sm:$0xff]   ;;  %v2316_v4 = vld [vmem:[%s2905_s6 + $0x160] sm:$0xff]  }
  0x1f   : > { %2002 = vmatpush3.bf16.msra.mxu0 %v2290_v18  ;;  %v407_v62 = vld [vmem:[%s2551_s18 + $0xd0] sm:$0xff]  ;;  %v2313_v1 = vld [vmem:[%s2905_s6 + $0x1e8] sm:$0xff]   ;;  %v2317_v5 = vld [vmem:[%s2905_s6 + $0x1e0] sm:$0xff]  }
  0x20   : > { %2042 = vmatpush3.bf16.msra.mxu1 %v2291_v19  ;;  %2003 = vmatprep.subr.bf16.mxu0 %v2292_v20  ;;  %v455_v63 = vpack.c.bf16 %v407_v62, %v399_v60  ;;  %v2314_v2 = vld [vmem:[%s2905_s6 + $0x128] sm:$0xff]   ;;  %v2318_v6 = vld [vmem:[%s2905_s6 + $0x120] sm:$0xff]   ;;  %v416_v11 = vld [vmem:[%s2551_s18 + $0x118] sm:$0xff] }
  0x21   : > { %2043 = vmatprep.subr.bf16.mxu1 %v2293_v21  ;;  %v2315_v3 = vld [vmem:[%s2905_s6 + $0x1a8] sm:$0xff]   ;;  %v2319_v7 = vld [vmem:[%s2905_s6 + $0x1a0] sm:$0xff]   ;;  %v424_v12 = vld [vmem:[%s2551_s18 + $0x158] sm:$0xff] }
  0x22   : > { %v414_v8 = vld [vmem:[%s2551_s18 + $0x108] sm:$0xff]  ;;  %v413_v13 = vld [vmem:[%s2551_s18 + $0x100] sm:$0xff]  ;;  %v464_v14 = vpack.c.bf16 %v424_v12, %v416_v11  ;;  %v415_v16 = vld [vmem:[%s2551_s18 + $0x110] sm:$0xff] }
  0x23   : > { %2004 = vmatpush3.bf16.msra.mxu0 %v2294_v22  ;;  %v422_v9 = vld [vmem:[%s2551_s18 + $0x148] sm:$0xff]  ;;  %v421_v15 = vld [vmem:[%s2551_s18 + $0x140] sm:$0xff]  ;;  %v423_v17 = vld [vmem:[%s2551_s18 + $0x150] sm:$0xff] }
  0x24   : > { %2044 = vmatpush3.bf16.msra.mxu1 %v2295_v23  ;;  %2005 = vmatprep.subr.bf16.mxu0 %v2296_v24  ;;  %v462_v10 = vpack.c.bf16 %v422_v9, %v414_v8  ;;  %v461_v18 = vpack.c.bf16 %v421_v15, %v413_v13  ;;  %v463_v19 = vpack.c.bf16 %v423_v17, %v415_v16  ;;  %v2320_v20 = vld [vmem:[%s2905_s6 + $0x158] sm:$0xff]   ;;  %v2324_v24 = vld [vmem:[%s2905_s6 + $0x150] sm:$0xff]   ;;  %v429_v33 = vld [vmem:[%s2551_s18 + $0x180] sm:$0xff] }
  0x25   : > { %2045 = vmatprep.subr.bf16.mxu1 %v2297_v25  ;;  %v2321_v21 = vld [vmem:[%s2905_s6 + $0x1d8] sm:$0xff]   ;;  %v2325_v25 = vld [vmem:[%s2905_s6 + $0x1d0] sm:$0xff]   ;;  %v437_v34 = vld [vmem:[%s2551_s18 + $0x1c0] sm:$0xff] }
  0x26   : > { %v2322_v22 = vld [vmem:[%s2905_s6 + $0x118] sm:$0xff]   ;;  %v469_v36 = vpack.c.bf16 %v437_v34, %v429_v33  ;;  %v431_v37 = vld [vmem:[%s2551_s18 + $0x190] sm:$0xff]  ;;  %v2329_v41 = vld [vmem:[%s2905_s6 + $0x1c8] sm:$0xff]   ;;  %v2908_v34 = vmov 0  }
  0x27   : > { %2006 = vmatpush3.bf16.msra.mxu0 %v2298_v26  ;;  %v2323_v23 = vld [vmem:[%s2905_s6 + $0x198] sm:$0xff]   ;;  %v2326_v26 = vld [vmem:[%s2905_s6 + $0x110] sm:$0xff]   ;;  %v2330_v42 = vld [vmem:[%s2905_s6 + $0x108] sm:$0xff]   ;;  %2267 = vset.pattern.permute.xlu0 %v2908_v34 }
  0x28   : > { %2046 = vmatpush3.bf16.msra.mxu1 %v2299_v27  ;;  %2007 = vmatprep.subr.bf16.mxu0 %v2300_v28  ;;  %v2327_v27 = vld [vmem:[%s2905_s6 + $0x190] sm:$0xff]   ;;  %v430_v28 = vld [vmem:[%s2551_s18 + $0x188] sm:$0xff]  ;;  %v440_v32 = vld [vmem:[%s2551_s18 + $0x1d8] sm:$0xff] }
  0x29   : > { %2047 = vmatprep.subr.bf16.mxu1 %v2301_v29  ;;  %v438_v29 = vld [vmem:[%s2551_s18 + $0x1c8] sm:$0xff]  ;;  %v439_v38 = vld [vmem:[%s2551_s18 + $0x1d0] sm:$0xff]  ;;  %v385_v54 = vld [vmem:[%s2551_s18 + $0x20] sm:$0xff] }
  0x2a   : > { %v471_v39 = vpack.c.bf16 %v439_v38, %v431_v37  ;;  %v393_v55 = vld [vmem:[%s2551_s18 + $0x60] sm:$0xff]  ;;  %v395_v58 = vld [vmem:[%s2551_s18 + $0x70] sm:$0xff]  ;;  %v402_v59 = vld [vmem:[%s2551_s18 + $0xa8] sm:$0xff] }
  0x2b   : > { %2008 = vmatpush3.bf16.msra.mxu0 %v2302_v30  ;;  %v432_v30 = vld [vmem:[%s2551_s18 + $0x198] sm:$0xff]  ;;  %v410_v60 = vld [vmem:[%s2551_s18 + $0xe8] sm:$0xff]  ;;  %v425_v15 = vld [vmem:[%s2551_s18 + $0x160] sm:$0xff] }
  0x2c   : > { %2048 = vmatpush3.bf16.msra.mxu1 %v2303_v31  ;;  %2073 = vmatprep.subr.bf16.mxu0 %v2304_v44  ;;  %v470_v31 = vpack.c.bf16 %v438_v29, %v430_v28  ;;  %v472_v35 = vpack.c.bf16 %v440_v32, %v432_v30  ;;  %v2332_v44 = vld [vmem:[%s2905_s6 + $0x140] sm:$0xff]   ;;  %v458_v62 = vpack.c.bf16 %v410_v60, %v402_v59  ;;  %v420_v8 = vld [vmem:[%s2551_s18 + $0x138] sm:$0xff]  ;;  %v419_v16 = vld [vmem:[%s2551_s18 + $0x130] sm:$0xff]  ;;  %v2910_v32 = vmov 0.0  }
  0x2d   : > { %2113 = vmatprep.subr.bf16.mxu1 %v2305_v45  ;;  %v2333_v45 = vld [vmem:[%s2905_s6 + $0x1c0] sm:$0xff]   ;;  %v428_v9 = vld [vmem:[%s2551_s18 + $0x178] sm:$0xff]  ;;  %v427_v17 = vld [vmem:[%s2551_s18 + $0x170] sm:$0xff]  ;;  %380 = vst.msk [vmem:[#allocation2] sm:$0xff] %vm379_vm1, %v2910_v32 }
  0x2e   : > { %1022 = vmatmul.mubr.bf16.vlgmr.msra.gmra.mxu0 %v445_v40  ;;  %v2328_v40 = vld [vmem:[%s2905_s6 + $0x148] sm:$0xff]   ;;  %v468_v13 = vpack.c.bf16 %v428_v9, %v420_v8  ;;  %v435_v28 = vld [vmem:[%s2551_s18 + $0x1b0] sm:$0xff]  ;;  %v2724_v33 = vld [vmem:[%s2902_s3] sm:$0xff] }
  0x2f   : > { %1087 = vmatmul.mubr.bf16.vlgmr.msra.gmra.mxu1 %v447_v43  ;;  %2074 = vmatpush3.bf16.msra.mxu0 %v2306_v46  ;;  %v2331_v43 = vld [vmem:[%s2905_s6 + $0x188] sm:$0xff]   ;;  %v2334_v46 = vld [vmem:[%s2905_s6 + $0x100] sm:$0xff]   ;;  %v443_v29 = vld [vmem:[%s2551_s18 + $0x1f0] sm:$0xff]  ;;  %2914 = vst [vmem:[#allocation3_spill] sm:$0xff] %v2724_v33 }
  0x30   : > { %2114 = vmatpush3.bf16.msra.mxu1 %v2307_v47  ;;  %2075 = vmatprep.subr.bf16.mxu0 %v2308_v48  ;;  %v2335_v47 = vld [vmem:[%s2905_s6 + $0x180] sm:$0xff]   ;;  %v386_v48 = vld [vmem:[%s2551_s18 + $0x28] sm:$0xff] }
  0x31   : > { %2115 = vmatprep.subr.bf16.mxu1 %v2309_v49  ;;  %1029 = vmatprep.mubr.bf16.mxu0 %v454_v56  ;;  %v394_v49 = vld [vmem:[%s2551_s18 + $0x68] sm:$0xff]  ;;  %v387_v56 = vld [vmem:[%s2551_s18 + $0x30] sm:$0xff] }
  0x32   : > { %1094 = vmatprep.mubr.bf16.mxu1 %v456_v57  ;;  %v450_v52 = vpack.c.bf16 %v394_v49, %v386_v48  ;;  %v449_v57 = vpack.c.bf16 %v393_v55, %v385_v54  ;;  %1335 = vperm.xlu0 %2267, %v2724_v33  }
  0x33   : > { %2076 = vmatpush3.bf16.msra.mxu0 %v2310_v50  ;;  %v388_v50 = vld [vmem:[%s2551_s18 + $0x38] sm:$0xff] }
  0x34   : > { %2116 = vmatpush3.bf16.msra.mxu1 %v2311_v51  ;;  %2077 = vmatprep.subr.bf16.mxu0 %v2312_v0  ;;  %v396_v51 = vld [vmem:[%s2551_s18 + $0x78] sm:$0xff] }
  0x35   : > { %2117 = vmatprep.subr.bf16.mxu1 %v2313_v1  ;;  %v452_v53 = vpack.c.bf16 %v396_v51, %v388_v50  ;;  %v412_v0 = vld [vmem:[%s2551_s18 + $0xf8] sm:$0xff] }
  0x36   : > { %1030 = vmatmul.mubr.bf16.gmra.mxu0 %v453_v61  ;;  %v451_v61 = vpack.c.bf16 %v395_v58, %v387_v56 }
  0x37   : > { %1095 = vmatmul.mubr.bf16.gmra.mxu1 %v455_v63  ;;  %2078 = vmatpush3.bf16.msra.mxu0 %v2314_v2  ;;  %v404_v63 = vld [vmem:[%s2551_s18 + $0xb8] sm:$0xff]  ;;  %v401_v2 = vld [vmem:[%s2551_s18 + $0xa0] sm:$0xff] }
  0x38   : > { %2118 = vmatpush3.bf16.msra.mxu1 %v2315_v3  ;;  %2079 = vmatprep.subr.bf16.mxu0 %v2316_v4  ;;  %v460_v1 = vpack.c.bf16 %v412_v0, %v404_v63  ;;  %v409_v3 = vld [vmem:[%s2551_s18 + $0xe0] sm:$0xff]  ;;  %v403_v4 = vld [vmem:[%s2551_s18 + $0xb0] sm:$0xff] }
  0x39   : > { %2119 = vmatprep.subr.bf16.mxu1 %v2317_v5  ;;  %1037 = vmatprep.mubr.bf16.mxu0 %v462_v10  ;;  %v411_v5 = vld [vmem:[%s2551_s18 + $0xf0] sm:$0xff]  ;;  %v457_v10 = vpack.c.bf16 %v409_v3, %v401_v2 }
  0x3a   : > { %1102 = vmatprep.mubr.bf16.mxu1 %v464_v14  ;;  %v459_v11 = vpack.c.bf16 %v411_v5, %v403_v4  ;;  %v417_v14 = vld [vmem:[%s2551_s18 + $0x120] sm:$0xff] }
  0x3b   : > { %2080 = vmatpush3.bf16.msra.mxu0 %v2318_v6  ;;  %v418_v6 = vld [vmem:[%s2551_s18 + $0x128] sm:$0xff] }
  0x3c   : > { %2120 = vmatpush3.bf16.msra.mxu1 %v2319_v7  ;;  %2081 = vmatprep.subr.bf16.mxu0 %v2320_v20  ;;  %v426_v7 = vld [vmem:[%s2551_s18 + $0x168] sm:$0xff]  ;;  %v436_v20 = vld [vmem:[%s2551_s18 + $0x1b8] sm:$0xff] }
  0x3d   : > { %2121 = vmatprep.subr.bf16.mxu1 %v2321_v21  ;;  %v466_v12 = vpack.c.bf16 %v426_v7, %v418_v6  ;;  %v444_v21 = vld [vmem:[%s2551_s18 + $0x1f8] sm:$0xff] }
  0x3e   : > { %1038 = vmatmul.mubr.bf16.gmra.mxu0 %v461_v18  ;;  %v434_v18 = vld [vmem:[%s2551_s18 + $0x1a8] sm:$0xff] }
  0x3f   : > { %1103 = vmatmul.mubr.bf16.gmra.mxu1 %v463_v19  ;;  %2082 = vmatpush3.bf16.msra.mxu0 %v2322_v22  ;;  %v442_v19 = vld [vmem:[%s2551_s18 + $0x1e8] sm:$0xff]  ;;  %v465_v22 = vpack.c.bf16 %v425_v15, %v417_v14 }
  0x40   : > { %2122 = vmatpush3.bf16.msra.mxu1 %v2323_v23  ;;  %2083 = vmatprep.subr.bf16.mxu0 %v2324_v24  ;;  %v467_v23 = vpack.c.bf16 %v427_v17, %v419_v16  ;;  %v474_v24 = vpack.c.bf16 %v442_v19, %v434_v18 }
  0x41   : > { %2123 = vmatprep.subr.bf16.mxu1 %v2325_v25  ;;  %1045 = vmatprep.mubr.bf16.mxu0 %v470_v31  ;;  %v476_v25 = vpack.c.bf16 %v444_v21, %v436_v20  ;;  %v475_v31 = vpack.c.bf16 %v443_v29, %v435_v28 }
  0x42   : > { %1110 = vmatprep.mubr.bf16.mxu1 %v472_v35 }
  0x43   : > { %2084 = vmatpush3.bf16.msra.mxu0 %v2326_v26  ;;  %v433_v26 = vld [vmem:[%s2551_s18 + $0x1a0] sm:$0xff] }
  0x44   : > { %2124 = vmatpush3.bf16.msra.mxu1 %v2327_v27  ;;  %2085 = vmatprep.subr.bf16.mxu0 %v2328_v40  ;;  %v441_v27 = vld [vmem:[%s2551_s18 + $0x1e0] sm:$0xff] }
  0x45   : > { %2125 = vmatprep.subr.bf16.mxu1 %v2329_v41  ;;  %v473_v30 = vpack.c.bf16 %v441_v27, %v433_v26 }
  0x46   : > { %1046 = vmatmul.mubr.bf16.gmra.mxu0 %v469_v36 }
  0x47   : > { %1111 = vmatmul.mubr.bf16.gmra.mxu1 %v471_v39  ;;  %2086 = vmatpush3.bf16.msra.mxu0 %v2330_v42 }
  0x48   : > { %2126 = vmatpush3.bf16.msra.mxu1 %v2331_v43  ;;  %2087 = vmatprep.subr.bf16.mxu0 %v2332_v44 }
  0x49   : > { %2127 = vmatprep.subr.bf16.mxu1 %v2333_v45  ;;  %1151 = vmatprep.mubr.bf16.mxu0 %v450_v52 }
  0x4a   : > { %1216 = vmatprep.mubr.bf16.mxu1 %v452_v53 }
  0x4b   : > { %2088 = vmatpush3.bf16.msra.mxu0 %v2334_v46 }
  0x4c   : > { %2128 = vmatpush3.bf16.msra.mxu1 %v2335_v47 }
  0x4d   : > { %2180 = vmatprep.subr.mxu1 %v2910_v32 }
  0x4e   : > { %1152 = vmatmul.mubr.bf16.vlgmr.msra.gmra.mxu0 %v449_v57 }
  0x4f   : > { %1217 = vmatmul.mubr.bf16.vlgmr.msra.gmra.mxu1 %v451_v61  ;;  %1159 = vmatprep.mubr.bf16.mxu0 %v458_v62 }
  0x50   : > { %1224 = vmatprep.mubr.bf16.mxu1 %v460_v1 }
  0x56   : > { %1160 = vmatmul.mubr.bf16.gmra.mxu0 %v457_v10 }
  0x57   : > { %1225 = vmatmul.mubr.bf16.gmra.mxu1 %v459_v11  ;;  %1167 = vmatprep.mubr.bf16.mxu0 %v466_v12 }
  0x58   : > { %1232 = vmatprep.mubr.bf16.mxu1 %v468_v13 }
  0x5e   : > { %1168 = vmatmul.mubr.bf16.gmra.mxu0 %v465_v22 }
  0x5f   : > { %1233 = vmatmul.mubr.bf16.gmra.mxu1 %v467_v23  ;;  %1175 = vmatprep.mubr.bf16.mxu0 %v474_v24 }
  0x60   : > { %1240 = vmatprep.mubr.bf16.mxu1 %v476_v25 }
  0x66   : > { %1176 = vmatmul.mubr.bf16.gmra.mxu0 %v473_v30 }
  0x67   : > { %1241 = vmatmul.mubr.bf16.gmra.mxu1 %v475_v31 }
  0x68   : > { %2196 = vmatprep.mubr.msk.f32.mxu1 %vm2381_vm0, %v2910_v32 }
  0xee   : > { %v2009_v35 = vpop.f32.mrf.mxu0 }
  0xef   : > { %v2049_v36 = vpop.f32.mrf.mxu1 }
  0xf0   : > { %v2010_v37 = vpop.f32.mrf.mxu0 }
  0xf1   : > { %v2011_v38 = vadd.f32 %v2010_v37, %v2009_v35  ;;  %v2050_v39 = vpop.f32.mrf.mxu1 }
  0xf2   : > { %v2051_v40 = vadd.f32 %v2050_v39, %v2049_v36  ;;  %v2012_v41 = vpop.f32.mrf.mxu0 }
  0xf3   : > { %v2052_v42 = vpop.f32.mrf.mxu1 }
  0xf4   : > { %v2730_v43 = vadd.f32 %v2051_v40, %v2011_v38  ;;  %v2013_v44 = vpop.f32.mrf.mxu0 }
  0xf5   : > { %v2014_v45 = vadd.f32 %v2013_v44, %v2012_v41  ;;  %v2053_v46 = vpop.f32.mrf.mxu1 }
  0xf6   : > { %2915 = vst [vmem:[#allocation4_spill] sm:$0xff] %v2730_v43  ;;  %v2054_v47 = vadd.f32 %v2053_v46, %v2052_v42  ;;  %v2734_v49 = vpop.f32.mrf.mxu0 }
  0xf7   : > { %v2736_v50 = vpop.f32.mrf.mxu1 }
  0xf8   : > { %v2732_v48 = vadd.f32 %v2054_v47, %v2014_v45  ;;  %v2738_v51 = vpop.f32.mrf.mxu0 }
  0xf9   : > { %v2740_v52 = vpop.f32.mrf.mxu1 }
  0xfa   : > { %v2742_v53 = vpop.f32.mrf.mxu0 }
  0xfb   : > { %v2744_v54 = vpop.f32.mrf.mxu1 }
  0xfc   : > { %v2746_v55 = vpop.f32.mrf.mxu0 }
  0xfd   : > { %v2748_v56 = vpop.f32.mrf.mxu1 }
  0xfe   : > { %v2021_v57 = vpop.f32.mrf.mxu0 }
  0xff   : > { %v2061_v58 = vpop.f32.mrf.mxu1 }
 0x100   : > { %v2022_v59 = vpop.f32.mrf.mxu0 }
 0x101   : > { %v2062_v60 = vpop.f32.mrf.mxu1  ;;  %v2023_v33 = vadd.f32 %v2022_v59, %v2021_v57  ;;  %v2017_v57 = vadd.f32 %v2738_v51, %v2734_v49 }
 0x102   : > { %v2024_v61 = vpop.f32.mrf.mxu0 }
 0x103   : > { %v2064_v62 = vpop.f32.mrf.mxu1 }
 0x104   : > { %v2025_v63 = vpop.f32.mrf.mxu0 }
 0x105   : > { %v2065_v0 = vpop.f32.mrf.mxu1  ;;  %v2026_v45 = vadd.f32 %v2025_v63, %v2024_v61 }
 0x106   : > { %v2027_v1 = vpop.f32.mrf.mxu0  ;;  %v2066_v46 = vadd.f32 %v2065_v0, %v2064_v62 }
 0x107   : > { %v2067_v2 = vpop.f32.mrf.mxu1 }
 0x108   : > { %v2028_v3 = vpop.f32.mrf.mxu0 }
 0x109   : > { %v2068_v4 = vpop.f32.mrf.mxu1  ;;  %v2029_v39 = vadd.f32 %v2028_v3, %v2027_v1  ;;  %v2020_v1 = vadd.f32 %v2746_v55, %v2742_v53  ;;  %v1108_v3 = vadd.f32 %v2066_v46, %v2026_v45 }
 0x10a   : > { %v2030_v5 = vpop.f32.mrf.mxu0  ;;  %v2069_v40 = vadd.f32 %v2068_v4, %v2067_v2  ;;  %v2060_v2 = vadd.f32 %v2748_v56, %v2744_v54 }
 0x10b   : > { %v2070_v6 = vpop.f32.mrf.mxu1 }
 0x10c   : > { %v2031_v7 = vpop.f32.mrf.mxu0  ;;  %v1100_v53 = vadd.f32 %v2060_v2, %v2020_v1  ;;  %v2931_v1 = vmov 0  }
 0x10d   : > { %v2071_v8 = vpop.f32.mrf.mxu1  ;;  %v2032_v41 = vadd.f32 %v2031_v7, %v2030_v5 }
 0x10e   : > { %v2750_v9 = vpop.f32.mrf.mxu0  ;;  %v2072_v42 = vadd.f32 %v2071_v8, %v2070_v6  ;;  %v2922_v8 = vmov 0.0  }
 0x10f   : > { %v2752_v10 = vpop.f32.mrf.mxu1 }
 0x110   : > { %2916 = vst [vmem:[#allocation5_spill] sm:$0xff] %v2752_v10  ;;  %v2754_v11 = vpop.f32.mrf.mxu0 }
 0x111   : > { %v2756_v12 = vpop.f32.mrf.mxu1 }
 0x112   : > { %2917 = vst [vmem:[#allocation6_spill] sm:$0xff] %v2756_v12  ;;  %v2758_v13 = vpop.f32.mrf.mxu0  ;;  %v2063_v12 = vadd.f32 %v2062_v60, %v2061_v58  ;;  %v2057_v58 = vadd.f32 %v2740_v52, %v2736_v50 }
 0x113   : > { %v2760_v14 = vpop.f32.mrf.mxu1 }
 0x114   : > { %2918 = vst [vmem:[#allocation7_spill] sm:$0xff] %v2760_v14  ;;  %v2093_v15 = vpop.f32.mrf.mxu0  ;;  %v1116_v14 = vadd.f32 %v2072_v42, %v2032_v41  ;;  %v1105_v59 = vadd.f32 %v2063_v12, %v2023_v33  ;;  %v2091_v33 = vadd.f32 %v2754_v11, %v2750_v9 }
 0x115   : > { %v2762_v16 = vpop.f32.mrf.mxu1 }
 0x116   : > { %2919 = vst [vmem:[#allocation8_spill] sm:$0xff] %v2762_v16  ;;  %v2095_v17 = vpop.f32.mrf.mxu0  ;;  %v1113_v16 = vadd.f32 %v2069_v40, %v2029_v39  ;;  %v2384_v39 = vmov 1  }
 0x117   : > { %v2764_v18 = vpop.f32.mrf.mxu1  ;;  %2268 = vset.pattern.permute.xlu0 %v2384_v39  ;;  %2269 = vset.pattern.permute.xlu1 %v2384_v39 }
 0x118   : > { %2920 = vst [vmem:[#allocation9_spill] sm:$0xff] %v2764_v18  ;;  %v2096_v19 = vpop.f32.mrf.mxu0 }
 0x119   : > { %v2766_v20 = vpop.f32.mrf.mxu1  ;;  %v2097_v55 = vadd.f32 %v2096_v19, %v2095_v17  ;;  %v2925_v17 = vld [vmem:[#allocation4_spill] sm:$0xff] }
 0x11a   : > { %2921 = vst [vmem:[#allocation10_spill] sm:$0xff] %v2766_v20  ;;  %v2098_v21 = vpop.f32.mrf.mxu0 }
 0x11b   : > { %v2138_v22 = vpop.f32.mrf.mxu1  ;;  %v2926_v19 = vld [vmem:[#allocation7_spill] sm:$0xff] }
 0x11c   : > { %v2099_v23 = vpop.f32.mrf.mxu0 }
 0x11d   : > { %v2139_v24 = vpop.f32.mrf.mxu1  ;;  %v2100_v60 = vadd.f32 %v2099_v23, %v2098_v21  ;;  %v2928_v21 = vld [vmem:[#allocation5_spill] sm:$0xff] }
 0x11e   : > { %v2101_v25 = vpop.f32.mrf.mxu0  ;;  %v2140_v50 = vadd.f32 %v2139_v24, %v2138_v22  ;;  %v2929_v22 = vld [vmem:[#allocation6_spill] sm:$0xff] }
 0x11f   : > { %v2141_v26 = vpop.f32.mrf.mxu1  ;;  %v1165_v49 = vadd.f32 %v2100_v60, %v1100_v53  ;;  %v2131_v23 = vadd.f32 %v2929_v22, %v2928_v21 }
 0x120   : > { %v2102_v27 = vpop.f32.mrf.mxu0 }
 0x121   : > { %v2142_v28 = vpop.f32.mrf.mxu1  ;;  %v2103_v61 = vadd.f32 %v2102_v27, %v2101_v25  ;;  %v1250_v25 = vld [vmem:[%s2901_s2] sm:$0xff] }
 0x122   : > { %v2104_v29 = vpop.f32.mrf.mxu0  ;;  %v2143_v51 = vadd.f32 %v2142_v28, %v2141_v26  ;;  %v1249_v26 = vld [vmem:[#allocation2] sm:$0xff] }
 0x123   : > { %v2144_v30 = vpop.f32.mrf.mxu1  ;;  %v1170_v7 = vadd.f32 %v2103_v61, %v1105_v59 }
 0x124   : > { %v2105_v31 = vpop.f32.mrf.mxu0 }
 0x125   : > { %v2145_v35 = vpop.f32.mrf.mxu1  ;;  %v2106_v43 = vadd.f32 %v2105_v31, %v2104_v29  ;;  %v1235_v52 = vadd.f32 %v2143_v51, %v1170_v7  ;;  %v2387_v7 = vmov 2   ;;  %v1480_v51 = vld [vmem:[%s2904_s5 + $0x8] sm:$0xff] }
 0x126   : > { %v2107_v36 = vpop.f32.mrf.mxu0  ;;  %v2146_v54 = vadd.f32 %v2145_v35, %v2144_v30  ;;  %v1336_v30 = vpop.permute.xlu0 %1335 }
 0x127   : > { %v2147_v37 = vpop.f32.mrf.mxu1  ;;  %v1173_v4 = vadd.f32 %v2106_v43, %v1108_v3 }
 0x128   : > { %v2108_v38 = vpop.f32.mrf.mxu0 }
 0x129   : > { %v2148_v44 = vpop.f32.mrf.mxu1  ;;  %v2109_v34 = vadd.f32 %v2108_v38, %v2107_v36  ;;  %v1358_v38 = vld [vmem:[%s2902_s3 + $0x8] sm:$0xff] }
 0x12a   : > { %v2110_v47 = vpop.f32.mrf.mxu0  ;;  %v2149_v5 = vadd.f32 %v2148_v44, %v2147_v37  ;;  %v1355_v37 = vld [vmem:[%s2903_s4] sm:$0xff]  ;;  %v2930_v44 = vld [vmem:[#allocation3_spill] sm:$0xff] }
 0x12b   : > { %v2150_v32 = vpop.f32.mrf.mxu1  ;;  %v1178_v62 = vadd.f32 %v2109_v34, %v1113_v16  ;;  %v1097_v34 = vadd.f32 %v2057_v58, %v2017_v57  ;;  %v2924_v16 = vld [vmem:[#allocation10_spill] sm:$0xff] }
 0x12c   : > { %v2111_v10 = vpop.f32.mrf.mxu0 }
 0x12d   : > { %v2112_v20 = vadd.f32 %v2111_v10, %v2110_v47  ;;  %v2151_v18 = vpop.f32.mrf.mxu1  ;;  %v1243_v56 = vadd.f32 %v2149_v5, %v1178_v62  ;;  %v1238_v10 = vadd.f32 %v2146_v54, %v1173_v4  ;;  %v1162_v43 = vadd.f32 %v2097_v55, %v1097_v34  ;;  %v1356_v47 = vld [vmem:[%s2903_s4 + $0x8] sm:$0xff]  ;;  %v1479_v4 = vld [vmem:[%s2904_s5] sm:$0xff]  ;;  %v1485_v54 = vld [vmem:[%s2902_s3 + $0x10] sm:$0xff] }
 0x12e   : > { %v2152_v0 = vadd.f32 %v2151_v18, %v2150_v32  ;;  %v2094_v32 = vadd.f32 %v2093_v15, %v2758_v13  ;;  %v1230_v15 = vadd.f32 %v2140_v50, %v1165_v49  ;;  %v1154_v18 = vadd.f32 %v2091_v33, %v2925_v17  ;;  %2220 = vmatprep.mubr.msk.f32.mxu0 %vm1507_vm6, %v1479_v4  ;;  %v1482_v33 = vld [vmem:[%s2904_s5 + $0x18] sm:$0xff]  ;;  %v2338_v50 = vld [vmem:[%s2906_s7 + $0x4] ss:$12 sps:$4 sm:$0xff]  }
 0x12f   : > { %v1181_v63 = vadd.f32 %v2112_v20, %v1116_v14  ;;  %v2923_v14 = vld [vmem:[#allocation9_spill] sm:$0xff]  ;;  %v2927_v20 = vld [vmem:[#allocation8_spill] sm:$0xff] }
 0x130   : > { %v1157_v12 = vadd.f32 %v2094_v32, %v2732_v48  ;;  %v2137_v13 = vadd.f32 %v2924_v16, %v2923_v14  ;;  %v2134_v9 = vadd.f32 %v2927_v20, %v2926_v19  ;;  %v1219_v24 = vadd.f32 %v2131_v23, %v1154_v18 }
 0x131   : > { %v1246_v6 = vadd.f32 %v2152_v0, %v1181_v63 }
 0x132   : > { %v1227_v11 = vadd.f32 %v2137_v13, %v1162_v43  ;;  %v1222_v48 = vadd.f32 %v2134_v9, %v1157_v12  ;;  %v2336_v43 = vld [vmem:[%s2906_s7] ss:$12 sps:$4 sm:$0xff]  }
 0x133   : > { %2181 = vmatpush3.msra.mxu1 %v1246_v6 }
 0x134   : > { %2182 = vmatprep.subr.mxu1 %v2922_v8 }
 0x135   : > { %2183 = vmatpush3.msra.mxu1 %v1243_v56  ;;  %v1486_v56 = vld [vmem:[%s2902_s3 + $0x18] sm:$0xff] }
 0x136   : > { %2184 = vmatprep.subr.mxu1 %v2922_v8 }
 0x137   : > { %2185 = vmatpush3.msra.mxu1 %v1238_v10  ;;  %v1481_v10 = vld [vmem:[%s2904_s5 + $0x10] sm:$0xff] }
 0x138   : > { %2186 = vmatprep.subr.mxu1 %v2922_v8 }
 0x139   : > { %2187 = vmatpush3.msra.mxu1 %v1235_v52  ;;  %v2339_v52 = vld [vmem:[%s2906_s7 + $0x8] ss:$12 sps:$4 sm:$0xff]  }
 0x13a   : > { %2188 = vmatprep.subr.mxu1 %v2922_v8 }
 0x13b   : > { %2189 = vmatpush3.msra.mxu1 %v1230_v15 }
 0x13c   : > { %2190 = vmatprep.subr.mxu1 %v2922_v8 }
 0x13d   : > { %2191 = vmatpush3.msra.mxu1 %v1227_v11 }
 0x13e   : > { %2192 = vmatprep.subr.mxu1 %v2922_v8 }
 0x13f   : > { %2193 = vmatpush3.msra.mxu1 %v1222_v48 }
 0x140   : > { %2194 = vmatprep.subr.mxu1 %v2922_v8 }
 0x141   : > { %2195 = vmatpush3.msra.mxu1 %v1219_v24 }
 0x142   : > { %2197 = vmatmul.mubr.msk.f32.vlgmr.msra.gmra.mxu1 %vm1251_vm2, %v1250_v25 }
 0x143   : > { %2205 = vmatprep.mubr.msk.f32.mxu1 %vm1369_vm3, %v1355_v37 }
 0x202   : > { %v1321_v27 = vpop.f32.mrf.mxu1 }
 0x203   : > { %v1325_v28 = vadd.f32 %v1321_v27, %v1249_v26 }
 0x204   : > { %v2198_v29 = vpop.f32.mrf.mxu1 }
 0x205   : > { %1327 = vst.msk [vmem:[#allocation2] sm:$0xff] %vm379_vm1, %v1325_v28 }
 0x20c   : > { %v1331_v31 = vld [vmem:[#allocation2] sm:$0xff] }
 0x20d   : > { %v1338_v35 = vadd.f32 %v1336_v30, %v1331_v31 }
 0x20f   : > { %v1339_v36 = vmax.f32 %v1338_v35, 0.0 }
 0x211   : > { %1341 = vrot.lane.b32.xlu0 %v1339_v36, %s2383_s22 }
 0x215   : > { %1366 = vperm.xlu0 %2268, %v1358_v38  }
 0x219   : > { %2271 = vset.pattern.permute.xlu0 %v2387_v7 }
 0x283   : > { %v1342_v40 = vpop.permute.xlu0 %1341 }
 0x284   : > { %v1345_v41 = vsel %vm1344_vm4, 0.0, %v1342_v40 }
 0x285   : > { %v1347_v42 = vsel %vm1346_vm5, %v1345_v41, 0.0 }
 0x286   : > { %1352 = vrot.lane.b32.xlu1 %v1347_v42, %s2385_s9 }
 0x28a   : > { %1349 = vrot.lane.b32.xlu1 %v1347_v42, %s2386_s10  ;;  %v1759_v42 = vld [vmem:[%s364_s16] sm:$0xff] }
 0x28e   : > { %1361 = vperm.xlu1 %2269, %v2930_v44  }
 0x290   : > { %v1367_v2 = vpop.permute.xlu0 %1366 }
 0x292   : > { %2270 = vset.pattern.permute.xlu1 %v2387_v7 }
 0x2f8   : > { %v1353_v45 = vpop.permute.xlu1 %1352 }
 0x2f9   : > { %2199 = vmatprep.subr.mxu1 %v1353_v45 }
 0x2fa   : > { %2200 = vmatpush3.msra.mxu1 %v1353_v45  ;;  %v1762_v45 = vld [vmem:[%s364_s16 + $0x18] sm:$0xff] }
 0x2fc   : > { %v1350_v46 = vpop.permute.xlu1 %1349 }
 0x2fd   : > { %2201 = vmatprep.subr.mxu1 %v1350_v46 }
 0x2fe   : > { %2202 = vmatpush3.msra.mxu1 %v1350_v46  ;;  %v1763_v46 = vld [vmem:[%s364_s16 + $0x20] sm:$0xff] }
 0x2ff   : > { %2203 = vmatprep.subr.msk.mxu1 %vm1346_vm5, %v1345_v41 }
 0x300   : > { %2204 = vmatpush3.msk.msra.mxu1 %vm1346_vm5, %v1345_v41 }
 0x301   : > { %2206 = vmatmul.mubr.msk.f32.vlgmr.msra.gmra.mxu1 %vm1369_vm3, %v1356_v47  ;;  %2232 = vmatprep.subr.bf16.mxu1 %v2338_v50  ;;  %v1765_v47 = vld [vmem:[%s364_s16 + $0x30] sm:$0xff] }
 0x302   : > { %1699 = vmatprep.mubr.bf16.mxu1 %v2931_v1  ;;  %2233 = vmatpush1.bf16.msra.mxu1 %v2336_v43 }
 0x309   : > { %v1362_v61 = vpop.permute.xlu1 %1361 }
 0x3c1   : > { %v2207_v3 = vpop.f32.mrf.mxu1 }
 0x3c2   : > { %v1448_v62 = vadd.f32 %v2207_v3, %v1367_v2  ;;  %v1766_v2 = vld [vmem:[%s364_s16 + $0x38] sm:$0xff]  ;;  %v1761_v3 = vld [vmem:[%s364_s16 + $0x10] sm:$0xff] }
 0x3c3   : > { %v1442_v63 = vpop.f32.mrf.mxu1 }
 0x3c4   : > { %v1452_v0 = vmax.f32 %v1448_v62, 0.0  ;;  %v1443_v57 = vadd.f32 %v1442_v63, %v1362_v61  ;;  %v1768_v61 = vld [vmem:[%s364_s16 + $0x48] sm:$0xff]  ;;  %v1770_v63 = vld [vmem:[%s364_s16 + $0x58] sm:$0xff] }
 0x3c6   : > { %v1451_v58 = vmax.f32 %v1443_v57, 0.0  ;;  %1457 = vrot.lane.b32.xlu1 %v1452_v0, %s2383_s22  ;;  %v1769_v0 = vld [vmem:[%s364_s16 + $0x50] sm:$0xff]  ;;  %v1764_v57 = vld [vmem:[%s364_s16 + $0x28] sm:$0xff] }
 0x3c8   : > { %1455 = vrot.lane.b32.xlu0 %v1451_v58, %s2383_s22 }
 0x438   : > { %v1458_v59 = vpop.permute.xlu1 %1457 }
 0x439   : > { %v1462_v60 = vsel %vm1344_vm4, 0.0, %v1458_v59 }
 0x43a   : > { %v1456_v5 = vpop.permute.xlu0 %1455  ;;  %v1464_v6 = vsel %vm1346_vm5, %v1462_v60, 0.0 }
 0x43b   : > { %v1461_v53 = vsel %vm1344_vm4, 0.0, %v1456_v5  ;;  %1475 = vrot.lane.b32.xlu1 %v1464_v6, %s2385_s9 }
 0x43c   : > { %v1463_v55 = vsel %vm1346_vm5, %v1461_v53, 0.0 }
 0x43d   : > { %1473 = vrot.lane.b32.xlu0 %v1463_v55, %s2385_s9 }
 0x43f   : > { %1469 = vrot.lane.b32.xlu1 %v1464_v6, %s2386_s10 }
 0x441   : > { %1467 = vrot.lane.b32.xlu0 %v1463_v55, %s2386_s10 }
 0x443   : > { %1489 = vperm.xlu1 %2270, %v2930_v44   ;;  %v1760_v44 = vld [vmem:[%s364_s16 + $0x8] sm:$0xff] }
 0x445   : > { %1494 = vperm.xlu0 %2271, %v1358_v38  }
 0x447   : > { %1499 = vperm.xlu1 %2270, %v1485_v54  }
 0x44b   : > { %1504 = vperm.xlu1 %2270, %v1486_v56  }
 0x4ad   : > { %v1476_v34 = vpop.permute.xlu1 %1475 }
 0x4ae   : > { %2208 = vmatprep.subr.mxu0 %v1476_v34 }
 0x4af   : > { %2209 = vmatpush3.msra.mxu0 %v1476_v34  ;;  %v1474_v8 = vpop.permute.xlu0 %1473 }
 0x4b0   : > { %2210 = vmatprep.subr.mxu0 %v1474_v8 }
 0x4b1   : > { %v1470_v32 = vpop.permute.xlu1 %1469  ;;  %2211 = vmatpush3.msra.mxu0 %v1474_v8 }
 0x4b2   : > { %2212 = vmatprep.subr.mxu0 %v1470_v32 }
 0x4b3   : > { %2213 = vmatpush3.msra.mxu0 %v1470_v32  ;;  %v1468_v49 = vpop.permute.xlu0 %1467 }
 0x4b4   : > { %2214 = vmatprep.subr.mxu0 %v1468_v49 }
 0x4b5   : > { %2215 = vmatpush3.msra.mxu0 %v1468_v49 }
 0x4b6   : > { %2216 = vmatprep.subr.msk.mxu0 %vm1346_vm5, %v1462_v60 }
 0x4b7   : > { %2217 = vmatpush3.msk.msra.mxu0 %vm1346_vm5, %v1462_v60 }
 0x4b8   : > { %2218 = vmatprep.subr.msk.mxu0 %vm1346_vm5, %v1461_v53 }
 0x4b9   : > { %2219 = vmatpush3.msk.msra.mxu0 %vm1346_vm5, %v1461_v53 }
 0x4ba   : > { %2221 = vmatmul.mubr.msk.f32.vlgmr.msra.gmra.mxu0 %vm1507_vm6, %v1480_v51  ;;  %1671 = vmatprep.subr.bf16.mxu0 %v2338_v50 }
 0x4bb   : > { %2223 = vmatprep.mubr.msk.f32.mxu0 %vm1507_vm6, %v1481_v10  ;;  %1672 = vmatpush1.bf16.msra.mxu0 %v2336_v43 }
 0x4bc   : > { %2226 = vmatprep.subr.bf16.mxu0 %v2339_v52 }
 0x4be   : > { %2224 = vmatmul.mubr.msk.f32.gmra.mxu0 %vm1507_vm6, %v1482_v33  ;;  %v1490_v12 = vpop.permute.xlu1 %1489 }
 0x4bf   : > { %1689 = vmatprep.mubr.bf16.mxu0 %v2931_v1  ;;  %v1767_v1 = vld [vmem:[%s364_s16 + $0x40] sm:$0xff] }
 0x4c0   : > { %v1495_v14 = vpop.permute.xlu0 %1494 }
 0x4c2   : > { %v1500_v16 = vpop.permute.xlu1 %1499 }
 0x4c6   : > { %v1505_v9 = vpop.permute.xlu1 %1504 }
 0x57a   : > { %v2222_v13 = vpop.f32.mrf.mxu0 }
 0x57b   : > { %v1592_v15 = vadd.f32 %v2222_v13, %v1495_v14 }
 0x57c   : > { %v1586_v17 = vpop.f32.mrf.mxu0 }
 0x57d   : > { %v1587_v18 = vadd.f32 %v1586_v17, %v1490_v12  ;;  %v1980_v19 = vmul.f32 -1.442695, %v1592_v15 }
 0x57e   : > { %v2225_v20 = vpop.f32.mrf.mxu0 }
 0x57f   : > { %v1979_v11 = vmul.f32 -1.442695, %v1587_v18  ;;  %2340 = vpow2.f32 %v1980_v19  ;;  %v1602_v21 = vadd.f32 %v2225_v20, %v1505_v9 }
 0x580   : > { %v1596_v22 = vpop.f32.mrf.mxu0 }
 0x581   : > { %2342 = vpow2.f32 %v1979_v11  ;;  %v1982_v23 = vmul.f32 -1.442695, %v1602_v21  ;;  %v1597_v48 = vadd.f32 %v1596_v22, %v1500_v16 }
 0x583   : > { %2344 = vpow2.f32 %v1982_v23  ;;  %v1981_v24 = vmul.f32 -1.442695, %v1597_v48 }
 0x585   : > { %2346 = vpow2.f32 %v1981_v24 }
 0x58c   : > { %v2341_v25 = vpop.eup %2340 }
 0x58d   : > { %v1618_v26 = vadd.f32 1.0, %v2341_v25 }
 0x58e   : > { %v2343_v27 = vpop.eup %2342 }
 0x58f   : > { %v1617_v28 = vadd.f32 1.0, %v2343_v27  ;;  %2348 = vrcp.f32 %v1618_v26 }
 0x590   : > { %v2345_v29 = vpop.eup %2344 }
 0x591   : > { %2350 = vrcp.f32 %v1617_v28  ;;  %v1620_v30 = vadd.f32 1.0, %v2345_v29 }
 0x592   : > { %v2347_v31 = vpop.eup %2346 }
 0x593   : > { %v1619_v35 = vadd.f32 1.0, %v2347_v31  ;;  %2352 = vrcp.f32 %v1620_v30 }
 0x595   : > { %2354 = vrcp.f32 %v1619_v35 }
 0x59c   : > { %v2349_v36 = vpop.eup %2348 }
 0x59e   : > { %v2351_v37 = vpop.eup %2350 }
 0x59f   : > { %v1629_v38 = vpack.c.bf16 %v2349_v36, %v2351_v37 }
 0x5a0   : > { %v2353_v39 = vpop.eup %2352 }
 0x5a1   : > { %1986 = vmatmul.mubr.msk.bf16.vlgmr.msra.gmra.mxu0 %vm379_vm1, %v1629_v38 }
 0x5a2   : > { %v2355_v40 = vpop.eup %2354  ;;  %2227 = vmatpush3.bf16.msra.mxu0 %v2339_v52  ;;  %2228 = vmatprep.mubr.msk.bf16.mxu0 %vm379_vm1, %v1629_v38 }
 0x5a3   : > { %v1630_v41 = vpack.c.bf16 %v2353_v39, %v2355_v40 }
 0x5a5   : > { %1987 = vmatmul.mubr.msk.bf16.vlgmr.msra.gmra.mxu1 %vm379_vm1, %v1630_v41 }
 0x5a9   : > { %2229 = vmatmul.mubr.msk.bf16.vlgmr.msra.gmra.mxu0 %vm379_vm1, %v1630_v41 }
 0x661   : > { %v1691_v62 = vpop.f32.mrf.mxu0 }
 0x662   : > { %v1771_v58 = vmul.f32 %v1759_v42, %v1691_v62 }
 0x663   : > { %v1693_v59 = vpop.f32.mrf.mxu0 }
 0x664   : > { %v1772_v60 = vmul.f32 %v1760_v44, %v1693_v59  ;;  %1783 = vst [vmem:[%s2876_s20] sm:$0xff] %v1771_v58 }
 0x665   : > { %v1695_v4 = vpop.f32.mrf.mxu0  ;;  %v1701_v5 = vpop.f32.mrf.mxu1 }
 0x666   : > { %v1774_v6 = vmul.f32 %v1762_v45, %v1695_v4  ;;  %v1777_v53 = vmul.f32 %v1765_v47, %v1701_v5  ;;  %1784 = vst [vmem:[%s2876_s20 + $0x8] sm:$0xff] %v1772_v60 }
 0x667   : > { %v1697_v55 = vpop.f32.mrf.mxu0  ;;  %v1703_v7 = vpop.f32.mrf.mxu1 }
 0x668   : > { %v1775_v54 = vmul.f32 %v1763_v46, %v1697_v55  ;;  %v1778_v56 = vmul.f32 %v1766_v2, %v1703_v7  ;;  %1786 = vst [vmem:[%s2876_s20 + $0x18] sm:$0xff] %v1774_v6  ;;  %1789 = vst [vmem:[%s2876_s20 + $0x30] sm:$0xff] %v1777_v53 }
 0x669   : > { %v2230_v34 = vpop.f32.mrf.mxu0  ;;  %v1705_v8 = vpop.f32.mrf.mxu1 }
 0x66a   : > { %v1779_v32 = vmul.f32 %v2230_v34, %v1767_v1  ;;  %v1780_v49 = vmul.f32 %v1768_v61, %v1705_v8  ;;  %1787 = vst [vmem:[%s2876_s20 + $0x20] sm:$0xff] %v1775_v54  ;;  %1790 = vst [vmem:[%s2876_s20 + $0x38] sm:$0xff] %v1778_v56 }
 0x66b   : > { %v1744_v51 = vpop.f32.mrf.mxu0  ;;  %v1707_v10 = vpop.f32.mrf.mxu1 }
 0x66c   : > { %v1773_v33 = vmul.f32 %v1761_v3, %v1744_v51  ;;  %v1781_v43 = vmul.f32 %v1769_v0, %v1707_v10  ;;  %1791 = vst [vmem:[%s2876_s20 + $0x40] sm:$0xff] %v1779_v32  ;;  %1792 = vst [vmem:[%s2876_s20 + $0x48] sm:$0xff] %v1780_v49 }
 0x66d   : > { %v2231_v50 = vpop.f32.mrf.mxu0 }
 0x66e   : > { %v1782_v52 = vmul.f32 %v2231_v50, %v1770_v63  ;;  %1785 = vst [vmem:[%s2876_s20 + $0x10] sm:$0xff] %v1773_v33  ;;  %1793 = vst [vmem:[%s2876_s20 + $0x50] sm:$0xff] %v1781_v43 }
 0x66f   : > { %v1747_v12 = vpop.f32.mrf.mxu0 }
 0x670   : > { %v1776_v14 = vmul.f32 %v1764_v57, %v1747_v12  ;;  %1794 = vst [vmem:[%s2876_s20 + $0x58] sm:$0xff] %v1782_v52 }
 0x672   : > { %1788 = vst [vmem:[%s2876_s20 + $0x28] sm:$0xff] %v1776_v14 }
 0x673 PF: > { %s18_s29 = sadd.s32 1, %s2378_s29   ;;  %s2932_s27 = smov %s2374_s28 }
 0x674   : > { %p15_p5 = scmp.ge.s32.totalorder %s18_s29, 4   ;;  %s2933_s28 = smov %s2935_s30 }
 0x676   :  { %17 = sbr.rel (!%p15_p5) target bundleno = 2 (0x2), region = 96 }

</bundles_post_ra>
